<compile_context>
chip_gen: v7x
topology: tpu7x:2x2x1
jax: 0.10.0
libtpu: 0.0.40
codegen_flags: <defaults>
</compile_context>

<pallas_src>
import functools

import jax
import jax.numpy as jnp
from jax.experimental import pallas as pl
from jax.experimental.pallas import tpu as pltpu


# --------------------------------------------------------------------------
# Kernels
# --------------------------------------------------------------------------

def _pointwise_kernel(w_ref, b_ref, x_ref, o_ref, halo_ref, *,
                      K, dilation, pad, carry_halo):
    """Cin == Cout == 1 path.  x_ref/o_ref: (NB, TL); halo_ref: (NB, max(pad,1)).

    w_ref: SMEM f32[K], b_ref: SMEM f32[1].
    """
    j = pl.program_id(1)                       # L-tile index (sequential axis)
    NB, TL = o_ref.shape

    x = x_ref[...].astype(jnp.float32)         # (NB, TL)

    if pad > 0:
        @pl.when(j == 0)
        def _init_halo():                      # causal left zero-pad
            halo_ref[...] = jnp.zeros_like(halo_ref)

        xw = jnp.concatenate([halo_ref[...], x], axis=-1)   # (NB, pad+TL)
        if carry_halo:                         # static: only when >1 L-tile
            halo_ref[...] = x[:, TL - pad:]    # carry tail to next L-tile
    else:
        xw = x

    # Bias folded into the accumulator init; K scalar-weight FMAs over the
    # full (NB, TL) tile -> dense sublane/lane occupancy, unmasked store.
    acc = jnp.zeros((NB, TL), jnp.float32) + b_ref[0]
    for k in range(K):
        acc = acc + w_ref[k] * xw[:, k * dilation: k * dilation + TL]
    o_ref[...] = acc.astype(o_ref.dtype)


def _small_kernel(w_ref, b_ref, x_ref, o_ref, halo_ref, *,
                  K, dilation, pad, Cin, Cout, carry_halo):
    """Small-channel path (Cin, Cout <= 8), batch-folded.

    w_ref: SMEM f32[Cout*Cin*K], b_ref: SMEM f32[Cout]
    x_ref: (NB, Cin, TL); o_ref: (NB, Cout, TL); halo_ref: (NB, Cin, max(pad,1))
    """
    j = pl.program_id(1)
    NB, _, TL = o_ref.shape

    x = x_ref[...].astype(jnp.float32)

    if pad > 0:
        @pl.when(j == 0)
        def _init_halo():
            halo_ref[...] = jnp.zeros_like(halo_ref)

        xw = jnp.concatenate([halo_ref[...], x], axis=-1)   # (NB, Cin, pad+TL)
        if carry_halo:
            halo_ref[...] = x[..., TL - pad:]
    else:
        xw = x

    # Fully unrolled scalar-FMA accumulation; each output channel row is
    # stored as soon as it is produced (no concat of rows, fewer live vregs).
    for o in range(Cout):
        acc = jnp.zeros((NB, TL), jnp.float32) + b_ref[o]
        for c in range(Cin):
            xc = xw[:, c, :]                                 # (NB, pad+TL)
            for k in range(K):
                w = w_ref[(o * Cin + c) * K + k]
                acc = acc + w * xc[:, k * dilation: k * dilation + TL]
        o_ref[:, o, :] = acc.astype(o_ref.dtype)


def _mxu_kernel(w_ref, b_ref, x_ref, o_ref, halo_ref, *,
                K, dilation, pad, carry_halo):
    """Larger channel counts: single tap-fused MXU matmul per tile.

    w_ref: VMEM f32 (Cout, K*Cin); b_ref: VMEM f32 (Cout, 1)
    x_ref: (Cin, TL); o_ref: (Cout, TL); halo_ref: (Cin, max(pad,1))
    """
    j = pl.program_id(1)
    TL = o_ref.shape[-1]

    x = x_ref[...].astype(jnp.float32)

    if pad > 0:
        @pl.when(j == 0)
        def _init_halo():
            halo_ref[...] = jnp.zeros_like(halo_ref)

        xw = jnp.concatenate([halo_ref[...], x], axis=-1)    # (Cin, pad+TL)
        if carry_halo:
            halo_ref[...] = x[:, TL - pad:]
    else:
        xw = x

    # Stack the K dilated taps along the contracting (sublane) dim and run a
    # single deep matmul instead of K shallow per-tap matmuls + K adds.
    xs = jnp.concatenate(
        [xw[:, k * dilation: k * dilation + TL] for k in range(K)], axis=0)
    out = jnp.dot(w_ref[...], xs, preferred_element_type=jnp.float32)
    o_ref[...] = (out + b_ref[...]).astype(o_ref.dtype)


# --------------------------------------------------------------------------
# Tiling heuristics
# --------------------------------------------------------------------------

def _vmem_limit_bytes():
    """Generation-aware VMEM budget (v7x has 64 MiB, v5e/v6e 128 MiB)."""
    try:
        cap = int(pltpu.get_tpu_info().vmem_capacity_bytes)
    except Exception:
        cap = 64 * 1024 * 1024
    return max(32 * 1024 * 1024, min(int(cap * 0.7), 96 * 1024 * 1024))


def _pick_l_tile(L, cap_elems):
    """Largest multiple of 128 <= cap_elems that divides L; else L itself."""
    if L % 128 != 0:
        return L                               # ragged L -> single tile
    cap = max(128, (min(cap_elems, L) // 128) * 128)
    for t in range(cap, 0, -128):
        if L % t == 0:
            return t
    return L


def _choose_nb(N, cap):
    """Largest batch fold NB dividing N that keeps the sublane dim legal
    (multiple of 8 or the full batch) and roughly respects the byte cap."""
    divisors = [d for d in range(1, N + 1) if N % d == 0]
    legal = [d for d in divisors if d % 8 == 0 or d == N]
    under = [d for d in legal if d <= cap]
    if under:
        return max(under)
    return min(legal)                          # soft cap may be exceeded


# --------------------------------------------------------------------------
# Wrapper
# --------------------------------------------------------------------------

def causal_conv1d(x, weight, bias, *, dilation=1, max_tl=None,
                  target_block_bytes=None, small_channel_limit=8):
    """x: (N, Cin, L), weight: (Cout, Cin, K), bias: (Cout,) -> (N, Cout, L)."""
    N, Cin, L = x.shape
    Cout, Cin_w, K = weight.shape
    assert Cin == Cin_w
    pad = dilation * (K - 1)
    itemsize = jnp.dtype(x.dtype).itemsize

    vmem_limit = _vmem_limit_bytes()
    if target_block_bytes is None:
        # ~6x the x-block lives in VMEM at once (2x in, 2x out, temporaries).
        target_block_bytes = min(4 * 1024 * 1024, vmem_limit // 8)

    pointwise = (Cin == 1 and Cout == 1)
    small = (not pointwise) and (Cin <= small_channel_limit
                                 and Cout <= small_channel_limit)

    rows_per_batch = 1 if pointwise else Cin
    cap_elems = max(128, target_block_bytes // max(1, rows_per_batch * itemsize))
    if max_tl is not None:
        cap_elems = min(cap_elems, max_tl)
    TL = _pick_l_tile(L, cap_elems)
    if pad > TL:                               # halo must fit within one tile
        TL = L
    num_tiles = L // TL
    carry_halo = num_tiles > 1

    if pointwise or small:
        bytes_per_batch = max(1, rows_per_batch * TL * itemsize)
        nb_cap = max(1, target_block_bytes // bytes_per_batch)
        NB = _choose_nb(N, nb_cap)
    else:
        NB = 1

    if pointwise:
        # Squeeze the channel dims away: dense (NB, TL) blocks, full vregs.
        x_in = x.reshape(N, L)
        w_in = weight.astype(jnp.float32).reshape(K)
        b_in = bias.astype(jnp.float32).reshape(1)
        kernel = functools.partial(_pointwise_kernel, K=K, dilation=dilation,
                                   pad=pad, carry_halo=carry_halo)
        grid = (N // NB, num_tiles)
        in_specs = [
            pl.BlockSpec(memory_space=pltpu.MemorySpace.SMEM),
            pl.BlockSpec(memory_space=pltpu.MemorySpace.SMEM),
            pl.BlockSpec((NB, TL), lambda b, j: (b, j)),
        ]
        out_specs = pl.BlockSpec((NB, TL), lambda b, j: (b, j))
        out_shape = jax.ShapeDtypeStruct((N, L), x.dtype)
        scratch = [pltpu.VMEM((NB, max(pad, 1)), jnp.float32)]
    elif small:
        x_in = x
        w_in = weight.astype(jnp.float32).reshape(-1)        # (Cout*Cin*K,)
        b_in = bias.astype(jnp.float32).reshape(-1)          # (Cout,)
        kernel = functools.partial(_small_kernel, K=K, dilation=dilation,
                                   pad=pad, Cin=Cin, Cout=Cout,
                                   carry_halo=carry_halo)
        grid = (N // NB, num_tiles)
        in_specs = [
            pl.BlockSpec(memory_space=pltpu.MemorySpace.SMEM),
            pl.BlockSpec(memory_space=pltpu.MemorySpace.SMEM),
            pl.BlockSpec((NB, Cin, TL), lambda b, j: (b, 0, j)),
        ]
        out_specs = pl.BlockSpec((NB, Cout, TL), lambda b, j: (b, 0, j))
        out_shape = jax.ShapeDtypeStruct((N, Cout, L), x.dtype)
        scratch = [pltpu.VMEM((NB, Cin, max(pad, 1)), jnp.float32)]
    else:
        # Tap-fused weights: (Cout, K*Cin) with column index k*Cin + c.
        x_in = x
        w_in = jnp.transpose(weight.astype(jnp.float32),
                             (0, 2, 1)).reshape(Cout, K * Cin)
        b_in = bias.astype(jnp.float32).reshape(Cout, 1)
        kernel = functools.partial(_mxu_kernel, K=K, dilation=dilation,
                                   pad=pad, carry_halo=carry_halo)
        grid = (N, num_tiles)
        in_specs = [
            pl.BlockSpec((Cout, K * Cin), lambda b, j: (0, 0)),
            pl.BlockSpec((Cout, 1), lambda b, j: (0, 0)),
            pl.BlockSpec((None, Cin, TL), lambda b, j: (b, 0, j)),
        ]
        out_specs = pl.BlockSpec((None, Cout, TL), lambda b, j: (b, 0, j))
        out_shape = jax.ShapeDtypeStruct((N, Cout, L), x.dtype)
        scratch = [pltpu.VMEM((Cin, max(pad, 1)), jnp.float32)]

    cost = pl.CostEstimate(
        flops=2 * N * Cout * Cin * K * L,
        transcendentals=0,
        bytes_accessed=int(x.size * itemsize + N * Cout * L * itemsize
                           + weight.size * 4 + bias.size * 4))

    out = pl.pallas_call(
        kernel,
        out_shape=out_shape,
        grid=grid,
        in_specs=in_specs,
        out_specs=out_specs,
        scratch_shapes=scratch,
        compiler_params=pltpu.CompilerParams(
            # NOTE: the L-tile axis (grid axis 1) carries the causal halo in
            # VMEM scratch across iterations -> it MUST stay innermost and
            # sequential ("arbitrary").  Only the batch axis may be sharded
            # across TensorCores.
            dimension_semantics=("parallel", "arbitrary"),
            vmem_limit_bytes=vmem_limit),
        cost_estimate=cost,
    )(w_in, b_in, x_in)

    if pointwise:
        out = out.reshape(N, 1, L)
    return out


# --------------------------------------------------------------------------
# Pure-JAX reference
# --------------------------------------------------------------------------

def causal_conv1d_ref(x, weight, bias, *, dilation=1):
    """y[t] = b + sum_k w[k] @ x[t - pad + k*d] (zero-padded on the left)."""
    N, Cin, L = x.shape
    Cout, _, K = weight.shape
    pad = dilation * (K - 1)
    xp = jnp.pad(x.astype(jnp.float32), ((0, 0), (0, 0), (pad, 0)))
    y = jnp.zeros((N, Cout, L), jnp.float32)
    for k in range(K):
        xk = xp[:, :, k * dilation: k * dilation + L]
        y = y + jnp.einsum("oc,bcl->bol", weight[:, :, k].astype(jnp.float32),
                           xk, precision=jax.lax.Precision.HIGHEST)
    return (y + bias.astype(jnp.float32).reshape(1, Cout, 1)).astype(x.dtype)


if __name__ == "__main__":
    key = jax.random.PRNGKey(0)

    def make_case(k, N, Cin, Cout, K, L):
        kx, kw, kb = jax.random.split(k, 3)
        bound = (1.0 / (Cin * K)) ** 0.5       # PyTorch Conv1d-style init
        w = jax.random.uniform(kw, (Cout, Cin, K), jnp.float32, -bound, bound)
        b = jax.random.uniform(kb, (Cout,), jnp.float32, -bound, bound)
        x = jax.random.normal(kx, (N, Cin, L), jnp.float32)
        return x, w, b

    k1, k2, k3, k4 = jax.random.split(key, 4)

    # 1) Module spec: CausalConv1d(1, 1, kernel_size=2, dilation=1) on (2,1,16)
    #    -> pointwise (vectorized) path, single L tile, NB = N.
    x, w, b = make_case(k1, 2, 1, 1, 2, 16)
    y = jax.block_until_ready(causal_conv1d(x, w, b, dilation=1))
    assert y.shape == (2, 1, 16)
    assert jnp.allclose(y, causal_conv1d_ref(x, w, b, dilation=1),
                        atol=1e-5, rtol=1e-5)

    # 2) Pointwise path, multi-tile halo carry with batch folding (NB=8).
    x, w, b = make_case(k4, 8, 1, 1, 2, 512)
    y = jax.block_until_ready(causal_conv1d(x, w, b, dilation=1, max_tl=256))
    assert jnp.allclose(y, causal_conv1d_ref(x, w, b, dilation=1),
                        atol=1e-5, rtol=1e-5)

    # 3) General small-channel path: dilation + multi-tile halo + batch fold.
    x, w, b = make_case(k2, 2, 3, 2, 3, 256)
    y = jax.block_until_ready(causal_conv1d(x, w, b, dilation=2, max_tl=128))
    assert jnp.allclose(y, causal_conv1d_ref(x, w, b, dilation=2),
                        atol=1e-5, rtol=1e-5)

    # 4) Larger channels -> tap-fused MXU matmul path, multi-tile.
    x, w, b = make_case(k3, 2, 32, 16, 2, 256)
    y = jax.block_until_ready(causal_conv1d(x, w, b, dilation=1, max_tl=128))
    assert jnp.allclose(y, causal_conv1d_ref(x, w, b, dilation=1),
                        atol=1e-2, rtol=1e-2)

    print("KERNEL_OK")
</pallas_src>

<mosaic_0001>
module attributes {stable_mosaic.version = 11 : i64} {
  func.func @_pointwise_kernel(%arg0: i32, %arg1: i32, %arg2: memref<2xf32, #tpu.memory_space<smem>>, %arg3: memref<1xf32, #tpu.memory_space<smem>>, %arg4: memref<2x16xf32, #tpu.memory_space<vmem>>, %arg5: memref<2x16xf32, #tpu.memory_space<vmem>>, %arg6: memref<2x1xf32, #tpu.memory_space<vmem>>) attributes {dimension_semantics = [#tpu.dimension_semantics<parallel>, #tpu.dimension_semantics<arbitrary>], iteration_bounds = array<i64: 1, 1>, scalar_prefetch = 0 : i64, scratch_operands = 1 : i64, tpu.core_type = #tpu.core_type<tc>, window_params = [{transform_indices = @transform_0, window_bounds = array<i64: 2>}, {transform_indices = @transform_1, window_bounds = array<i64: 1>}, {transform_indices = @transform_2, window_bounds = array<i64: 2, 16>}, {transform_indices = @transform_3, window_bounds = array<i64: 2, 16>}]} {
    %c0 = arith.constant 0 : index
    %c0_0 = arith.constant 0 : index
    %0 = vector.load %arg4[%c0, %c0_0] : memref<2x16xf32, #tpu.memory_space<vmem>>, vector<2x16xf32>
    %c0_i32 = arith.constant 0 : i32
    %1 = arith.cmpi eq, %arg1, %c0_i32 : i32
    %2 = arith.extui %1 : i1 to i32
    %c0_i32_1 = arith.constant 0 : i32
    %3 = arith.cmpi ne, %2, %c0_i32_1 : i32
    scf.if %3 {
      %cst_8 = arith.constant 0.000000e+00 : f32
      %21 = vector.broadcast %cst_8 : f32 to vector<2x1xf32>
      %c0_9 = arith.constant 0 : index
      %c0_10 = arith.constant 0 : index
      %22 = vector.load %arg6[%c0_9, %c0_10] : memref<2x1xf32, #tpu.memory_space<vmem>>, vector<2x1xf32>
      tpu.vector_store %arg6[%c0_9, %c0_10], %21 {strides = array<i32>} : memref<2x1xf32, #tpu.memory_space<vmem>>, vector<2x1xf32>,
    } else {
    }
    %c0_2 = arith.constant 0 : index
    %c0_3 = arith.constant 0 : index
    %4 = vector.load %arg6[%c0_2, %c0_3] : memref<2x1xf32, #tpu.memory_space<vmem>>, vector<2x1xf32>
    %5 = tpu.concatenate %4, %0 in 1 : vector<2x1xf32>, vector<2x16xf32> -> vector<2x17xf32>
    %cst = arith.constant 0.000000e+00 : f32
    %6 = vector.broadcast %cst : f32 to vector<2x16xf32>
    %c0_4 = arith.constant 0 : index
    %7 = memref.load %arg3[%c0_4] : memref<1xf32, #tpu.memory_space<smem>>
    %8 = vector.broadcast %7 : f32 to vector<2x16xf32>
    %9 = arith.addf %6, %8 : vector<2x16xf32>
    %c0_5 = arith.constant 0 : index
    %10 = memref.load %arg2[%c0_5] : memref<2xf32, #tpu.memory_space<smem>>
    %11 = vector.extract_strided_slice %5 {offsets = [0, 0], sizes = [2, 16], strides = [1, 1]} : vector<2x17xf32> to vector<2x16xf32>
    %12 = vector.broadcast %10 : f32 to vector<2x16xf32>
    %13 = arith.mulf %12, %11 : vector<2x16xf32>
    %14 = arith.addf %9, %13 : vector<2x16xf32>
    %c1 = arith.constant 1 : index
    %15 = memref.load %arg2[%c1] : memref<2xf32, #tpu.memory_space<smem>>
    %16 = vector.extract_strided_slice %5 {offsets = [0, 1], sizes = [2, 16], strides = [1, 1]} : vector<2x17xf32> to vector<2x16xf32>
    %17 = vector.broadcast %15 : f32 to vector<2x16xf32>
    %18 = arith.mulf %17, %16 : vector<2x16xf32>
    %19 = arith.addf %14, %18 : vector<2x16xf32>
    %c0_6 = arith.constant 0 : index
    %c0_7 = arith.constant 0 : index
    %20 = vector.load %arg5[%c0_6, %c0_7] : memref<2x16xf32, #tpu.memory_space<vmem>>, vector<2x16xf32>
    tpu.vector_store %arg5[%c0_6, %c0_7], %19 {strides = array<i32>} : memref<2x16xf32, #tpu.memory_space<vmem>>, vector<2x16xf32>,
    return
  }
  func.func @transform_0(%arg0: i32, %arg1: i32) -> i32 {
    %c0_i32 = arith.constant 0 : i32
    %c0_i32_0 = arith.constant 0 : i32
    return %c0_i32 : i32
  }
  func.func @transform_1(%arg0: i32, %arg1: i32) -> i32 {
    %c0_i32 = arith.constant 0 : i32
    %c0_i32_0 = arith.constant 0 : i32
    return %c0_i32 : i32
  }
  func.func @transform_2(%arg0: i32, %arg1: i32) -> (i32, i32) {
    %c0_i32 = arith.constant 0 : i32
    return %arg0, %arg1 : i32, i32
  }
  func.func @transform_3(%arg0: i32, %arg1: i32) -> (i32, i32) {
    %c0_i32 = arith.constant 0 : i32
    return %arg0, %arg1 : i32, i32
  }
}

</mosaic_0001>

<bundles_post_ra>
// kernel: tpu_custom_call.1
= control target key start
LH: loop header
LB: loop body
LE: loop exit
PB: predicated region body
PF: predicated region fallthrough
CT: control target
= control target key end

     0   :  { %9 = vsyncpa [#allocation6], 0  ;;  %s165_s0 = inlined_call_operand.vmem [shape: f32[2], index: 0, kind: input, shape index: {}]   ;;  %s166_s1 = inlined_call_operand.<no memory space> [shape: f32[1], index: 1, kind: input, shape index: {}]   ;;  %s167_s2 = inlined_call_operand.vmem [shape: f32[2,16], index: 2, kind: input, shape index: {}]   ;;  %s168_s3 = inlined_call_operand.hbm [shape: f32[2,16], index: 3, kind: output, shape index: {}]  }
   0x1   :  { %10 = vsyncpa [#allocation5], 0  ;;  %s17_s14 = sshll.u32 %s165_s0, 4  ;;  %s18_s14 = int_to_ptr.vmem [resolvable:$true] %s17_s14 }
   0x2   :  { %s81_s15 = scalar_lea.vmem %s18_s14, 16  ;;  %p86_p1 = scmp.lt.s32.totalorder %s18_s14, %s18_s14 }
   0x3   :  { %p82_p0 = scmp.ne.s32.totalorder %s18_s14, %s81_s15  ;;  %p87_p2 = scmp.lt.s32.totalorder %s81_s15, %s81_s15 }
   0x5   :  { %p88_p3 = por %p87_p2, %p86_p1 }
   0x7   :  { %p89_p4 = pnand %p88_p3, %p82_p0 }
   0x9   :  { %92 = shalt.err (!%p89_p4)
}
   0xa   :  { %s119_s16 = smov [#allocation4]  }
   0xb   :  { %20 = dma.vmem_to_smem %s18_s14, 16, %s119_s16, [#allocation6]  }
   0xc   :  { %115 = dma.done.wait [#allocation6], 16  }
   0xd   :  { %116 = vsyncadd [#allocation6], 4294967280 }
   0xe   :  { %28 = sfence }
   0xf   :  { %v29_v0 = vld [vmem:[%s167_s2] sm:$0x3]  ;;  %vm34_vm0 = vcmask 1024   ;;  %s120_s19 = smov 1   ;;  %v121_v1 = vmov 0.0   ;;  %s75_s0 = sld [smem:[#allocation4 + $0x1]]  ;;  %v44_v9 = vstv %s166_s1 }
  0x10   :  { %38 = vrot.lane.b32.xlu0 %v29_v0, %s120_s19  ;;  %35 = vst.msk [vmem:[#allocation2] sm:$0x3] %vm34_vm0, %v121_v1  ;;  %vm41_vm1 = vcmask 7168   ;;  %s122_s20 = smov 127   ;;  %s46_s21 = sld [smem:[#allocation4]]  ;;  %vm58_vm2 = vcmask 123904  }
  0x11   :  { %s123_s2 = smov [#allocation7]  }
  0x12   :  { %s66_s24 = sshll.u32 %s123_s2, 4  ;;  %s67_s24 = int_to_ptr.vmem [resolvable:$true] %s66_s24 }
  0x13   :  { %s93_s25 = scalar_lea.vmem %s67_s24, 32  ;;  %p98_p6 = scmp.lt.s32.totalorder %s67_s24, %s67_s24 }
  0x14   :  { %p94_p5 = scmp.ne.s32.totalorder %s67_s24, %s93_s25  ;;  %p99_p7 = scmp.lt.s32.totalorder %s93_s25, %s93_s25 }
  0x15   :  { %v51_v3 = vstv %s75_s0 }
  0x16   :  { %v47_v7 = vstv %s46_s21  ;;  %p100_p8 = por %p99_p7, %p98_p6 }
  0x17   :  { %v36_v2 = vld [vmem:[#allocation2] sm:$0x3] }
  0x18   :  { %p101_p9 = pnand %p100_p8, %p94_p5 }
  0x82   :  { %v39_v4 = vpop.permute.xlu0 %38 }
  0x83   :  { %v42_v5 = vsel %vm41_vm1, %v36_v2, %v39_v4 }
  0x84   :  { %v52_v6 = vmul.f32 %v51_v3, %v42_v5  ;;  %v48_v8 = vmul.f32 %v47_v7, %v42_v5 }
  0x86   :  { %54 = vrot.lane.b32.xlu0 %v52_v6, %s122_s20  ;;  %v49_v10 = vadd.f32 %v48_v8, %v44_v9 }
  0xf8   :  { %v55_v11 = vpop.permute.xlu0 %54 }
  0xf9   :  { %v57_v12 = vadd.f32 %v55_v11, %v49_v10 }
  0xfb   :  { %59 = vst.msk [vmem:[#allocation7] sm:$0x3] %vm58_vm2, %v57_v12 }
  0xfc   :  { %104 = shalt.err (!%p101_p9)
}
  0xfd   :  { %s105_s28 = scalar_lea.hbm %s168_s3, 32 }
  0xfe   :  { %p106_p10 = scmp.ne.s32.totalorder %s168_s3, %s105_s28  ;;  %p109_p11 = scmp.lt.u32.totalorder %s105_s28, %s168_s3 }
 0x100   :  { %p111_p12 = pnand %p109_p11, %p106_p10 }
 0x102   :  { %114 = shalt.err (!%p111_p12)
}
 0x103   :  { %69 = dma.vmem_to_hbm [thread:$0]  %s67_s24, 32, %s168_s3, [#allocation5]  }
 0x104   :  { %117 = dma.done.wait [#allocation5], 32  }
 0x105   :  { %118 = vsyncadd [#allocation5], 4294967264 }
 0x106   :  { %73 = vsyncpa [#allocation5], 1 }
 0x107   :  { %74 = vsyncpa [#allocation6], 1 }

</bundles_post_ra>
